<compile_context>
chip_gen: v7x
topology: tpu7x:2x2x1
jax: 0.10.0
libtpu: 0.0.40
codegen_flags: <defaults>
</compile_context>

<pallas_src>
import jax
import jax.numpy as jnp
from jax.experimental import pallas as pl
from jax.experimental.pallas import tpu as pltpu


# ------------------------------- kernel -------------------------------------
def integrate_kernel(mem0_ref, delta_ref, out_ref, mem_scratch):
    """mem0_ref: (bb, D)  delta_ref: (tt, bb, D)  out_ref: (tt, bb, D)
    mem_scratch: (bb, D) f32 — membrane carried across time chunks (grid axis 1).
    """
    # New batch block -> (re)initialize the membrane from mem0.
    @pl.when(pl.program_id(1) == 0)
    def _():
        mem_scratch[...] = mem0_ref[...].astype(jnp.float32)

    tt = delta_ref.shape[0]

    def step(t, mem):
        mem = mem + delta_ref[t].astype(jnp.float32)   # self.mem = self.mem + delta_mem
        out_ref[t] = mem.astype(out_ref.dtype)         # return self.mem
        return mem

    # Partial unroll: enough for the LLO scheduler, no code-size blowup for long chunks.
    mem_scratch[...] = jax.lax.fori_loop(
        0, tt, step, mem_scratch[...], unroll=min(tt, 8)
    )


# ---------------------------- tiling policy ----------------------------------
_CARRY_BUDGET = 32 * 1024          # max bytes carried in vregs per chunk (8 vregs @ f32)
_BLOCK_BUDGET = 4 * 1024 * 1024    # max bytes per (tt, bb, D) block (in or out)


def _pick_batch_block(B, D, itemsize):
    """Sublane-aligned batch block; keeps the vreg-carried membrane <= ~32 KiB and,
    for larger B, gives the parallel axis >= 2 steps for v7x megacore."""
    if B % 8 != 0 or B * D * itemsize <= _CARRY_BUDGET:
        return B  # full batch: contiguous HBM slabs, tiny carry
    for cand in (512, 256, 128, 64, 32, 16, 8):
        if B % cand == 0 and cand * D * itemsize <= _CARRY_BUDGET:
            return cand
    return B


def _pick_time_block(T, bb, D, itemsize):
    """Largest divisor of T whose block fits the per-block VMEM budget."""
    row_bytes = max(1, bb * D * itemsize)
    tt_cap = max(1, _BLOCK_BUDGET // row_bytes)
    for cand in range(min(T, tt_cap), 0, -1):
        if T % cand == 0:
            return cand
    return 1


# ------------------------------- wrapper ------------------------------------
def integrate_neuron_forward(mem0, delta, *, batch_block=None, time_block=None):
    """Run the Integrate_Neuron over a sequence of inputs.

    mem0:  (B, D) float32  initial membrane (zeros right after reset_mem()).
    delta: (T, B, D) float32  per-step delta_mem inputs.
    Returns (T, B, D): the membrane returned by each forward call.
    The module state `self.mem` after the T calls is out[-1].
    """
    T, B, D = delta.shape
    itemsize = jnp.dtype(delta.dtype).itemsize

    bb = batch_block if batch_block is not None else _pick_batch_block(B, D, itemsize)
    tt = time_block if time_block is not None else _pick_time_block(T, bb, D, itemsize)
    assert B % bb == 0 and T % tt == 0, "block sizes must divide (B, T)"

    grid = (B // bb, T // tt)  # (parallel batch axis, arbitrary/serial time axis)

    # Double-buffered delta-in + out blocks, plus mem0 block + f32 scratch.
    block_bytes = tt * bb * D * itemsize
    vmem_need = 4 * block_bytes + 2 * bb * D * itemsize + bb * D * 4
    vmem_limit = int(min(max(2 * vmem_need, 16 * 2**20), 28 * 2**20))

    return pl.pallas_call(
        integrate_kernel,
        out_shape=jax.ShapeDtypeStruct((T, B, D), delta.dtype),
        grid=grid,
        in_specs=[
            pl.BlockSpec((bb, D), lambda b, t: (b, 0)),
            pl.BlockSpec((tt, bb, D), lambda b, t: (t, b, 0)),
        ],
        out_specs=pl.BlockSpec((tt, bb, D), lambda b, t: (t, b, 0)),
        scratch_shapes=[pltpu.VMEM((bb, D), jnp.float32)],
        compiler_params=pltpu.CompilerParams(
            dimension_semantics=("parallel", "arbitrary"),
            vmem_limit_bytes=vmem_limit,
        ),
    )(mem0, delta)


def integrate_neuron_step(mem, delta_mem):
    """Single forward() call: returns the updated membrane (== new self.mem).
    NOTE: do not call this per-timestep in hot loops — drive streaming use through
    the fused (T, B, D) entry point; a T=1 pallas_call per step reinstates all the
    dispatch / tiny-DMA overhead the fused kernel removes."""
    return integrate_neuron_forward(mem, delta_mem[None])[0]


# --------------------------------- main --------------------------------------
if __name__ == "__main__":
    T, B, D = 8, 8, 128          # seq steps, batch, input_dim (lane-dense D)

    key = jax.random.PRNGKey(0)
    k1, k2 = jax.random.split(key)
    delta = jax.random.normal(k1, (T, B, D), dtype=jnp.float32)
    mem0 = jnp.zeros((B, D), dtype=jnp.float32)      # reset_mem()

    mems = jax.block_until_ready(integrate_neuron_forward(mem0, delta))
    ref = jnp.cumsum(delta, axis=0) + mem0[None]
    assert mems.shape == (T, B, D)
    assert mems.dtype == jnp.float32
    assert bool(jnp.all(jnp.isfinite(mems)))
    assert bool(jnp.max(jnp.abs(mems - ref)) < 1e-5)

    # Exercise the multi-chunk path: forced small tiles so the VMEM-scratch carry
    # across the "arbitrary" time axis and the parallel batch axis are both used.
    T2, B2 = 48, 16
    delta2 = jax.random.normal(k2, (T2, B2, D), dtype=jnp.float32)
    mem0_2 = jax.random.normal(jax.random.PRNGKey(1), (B2, D), dtype=jnp.float32)
    out2 = jax.block_until_ready(
        integrate_neuron_forward(mem0_2, delta2, batch_block=8, time_block=16))
    ref2 = jnp.cumsum(delta2, axis=0) + mem0_2[None]
    assert bool(jnp.max(jnp.abs(out2 - ref2)) < 1e-4)

    # Single forward() call (new self.mem after one call).
    new_mem = jax.block_until_ready(integrate_neuron_step(mem0, delta[0]))
    assert bool(jnp.max(jnp.abs(new_mem - delta[0])) < 1e-6)

    print("KERNEL_OK")
</pallas_src>

<mosaic_0001>
module attributes {stable_mosaic.version = 11 : i64} {
  func.func @integrate_kernel(%arg0: i32, %arg1: i32, %arg2: memref<8x128xf32, #tpu.memory_space<vmem>>, %arg3: memref<8x8x128xf32, #tpu.memory_space<vmem>>, %arg4: memref<8x8x128xf32, #tpu.memory_space<vmem>>, %arg5: memref<8x128xf32, #tpu.memory_space<vmem>>) attributes {dimension_semantics = [#tpu.dimension_semantics<parallel>, #tpu.dimension_semantics<arbitrary>], iteration_bounds = array<i64: 1, 1>, scalar_prefetch = 0 : i64, scratch_operands = 1 : i64, tpu.core_type = #tpu.core_type<tc>, window_params = [{transform_indices = @transform_0, window_bounds = array<i64: 8, 128>}, {transform_indices = @transform_1, window_bounds = array<i64: 8, 8, 128>}, {transform_indices = @transform_2, window_bounds = array<i64: 8, 8, 128>}]} {
    %c0_i32 = arith.constant 0 : i32
    %0 = arith.cmpi eq, %arg1, %c0_i32 : i32
    %1 = arith.extui %0 : i1 to i32
    %c0_i32_0 = arith.constant 0 : i32
    %2 = arith.cmpi ne, %1, %c0_i32_0 : i32
    scf.if %2 {
      %c0_37 = arith.constant 0 : index
      %c0_38 = arith.constant 0 : index
      %69 = vector.load %arg2[%c0_37, %c0_38] : memref<8x128xf32, #tpu.memory_space<vmem>>, vector<8x128xf32>
      %c0_39 = arith.constant 0 : index
      %c0_40 = arith.constant 0 : index
      %70 = vector.load %arg5[%c0_39, %c0_40] : memref<8x128xf32, #tpu.memory_space<vmem>>, vector<8x128xf32>
      tpu.vector_store %arg5[%c0_39, %c0_40], %69 {strides = array<i32>} : memref<8x128xf32, #tpu.memory_space<vmem>>, vector<8x128xf32>,
    } else {
    }
    %c0 = arith.constant 0 : index
    %c0_1 = arith.constant 0 : index
    %3 = vector.load %arg5[%c0, %c0_1] : memref<8x128xf32, #tpu.memory_space<vmem>>, vector<8x128xf32>
    %c0_i32_2 = arith.constant 0 : i32
    %4 = arith.index_cast %c0_i32_2 : i32 to index
    %c0_3 = arith.constant 0 : index
    %c0_4 = arith.constant 0 : index
    %5 = vector.load %arg3[%4, %c0_3, %c0_4] : memref<8x8x128xf32, #tpu.memory_space<vmem>>, vector<1x8x128xf32>
    %6 = vector.shape_cast %5 : vector<1x8x128xf32> to vector<8x128xf32>
    %7 = arith.addf %3, %6 : vector<8x128xf32>
    %8 = arith.index_cast %c0_i32_2 : i32 to index
    %c0_5 = arith.constant 0 : index
    %c0_6 = arith.constant 0 : index
    %9 = vector.load %arg4[%8, %c0_5, %c0_6] : memref<8x8x128xf32, #tpu.memory_space<vmem>>, vector<1x8x128xf32>
    %10 = vector.shape_cast %9 : vector<1x8x128xf32> to vector<8x128xf32>
    %11 = vector.shape_cast %7 : vector<8x128xf32> to vector<1x8x128xf32>
    tpu.vector_store %arg4[%8, %c0_5, %c0_6], %11 {strides = array<i32>} : memref<8x8x128xf32, #tpu.memory_space<vmem>>, vector<1x8x128xf32>,
    %c1_i32 = arith.constant 1 : i32
    %12 = arith.index_cast %c1_i32 : i32 to index
    %c0_7 = arith.constant 0 : index
    %c0_8 = arith.constant 0 : index
    %13 = vector.load %arg3[%12, %c0_7, %c0_8] : memref<8x8x128xf32, #tpu.memory_space<vmem>>, vector<1x8x128xf32>
    %14 = vector.shape_cast %13 : vector<1x8x128xf32> to vector<8x128xf32>
    %15 = arith.addf %7, %14 : vector<8x128xf32>
    %16 = arith.index_cast %c1_i32 : i32 to index
    %c0_9 = arith.constant 0 : index
    %c0_10 = arith.constant 0 : index
    %17 = vector.load %arg4[%16, %c0_9, %c0_10] : memref<8x8x128xf32, #tpu.memory_space<vmem>>, vector<1x8x128xf32>
    %18 = vector.shape_cast %17 : vector<1x8x128xf32> to vector<8x128xf32>
    %19 = vector.shape_cast %15 : vector<8x128xf32> to vector<1x8x128xf32>
    tpu.vector_store %arg4[%16, %c0_9, %c0_10], %19 {strides = array<i32>} : memref<8x8x128xf32, #tpu.memory_space<vmem>>, vector<1x8x128xf32>,
    %c2_i32 = arith.constant 2 : i32
    %20 = arith.index_cast %c2_i32 : i32 to index
    %c0_11 = arith.constant 0 : index
    %c0_12 = arith.constant 0 : index
    %21 = vector.load %arg3[%20, %c0_11, %c0_12] : memref<8x8x128xf32, #tpu.memory_space<vmem>>, vector<1x8x128xf32>
    %22 = vector.shape_cast %21 : vector<1x8x128xf32> to vector<8x128xf32>
    %23 = arith.addf %15, %22 : vector<8x128xf32>
    %24 = arith.index_cast %c2_i32 : i32 to index
    %c0_13 = arith.constant 0 : index
    %c0_14 = arith.constant 0 : index
    %25 = vector.load %arg4[%24, %c0_13, %c0_14] : memref<8x8x128xf32, #tpu.memory_space<vmem>>, vector<1x8x128xf32>
    %26 = vector.shape_cast %25 : vector<1x8x128xf32> to vector<8x128xf32>
    %27 = vector.shape_cast %23 : vector<8x128xf32> to vector<1x8x128xf32>
    tpu.vector_store %arg4[%24, %c0_13, %c0_14], %27 {strides = array<i32>} : memref<8x8x128xf32, #tpu.memory_space<vmem>>, vector<1x8x128xf32>,
    %c3_i32 = arith.constant 3 : i32
    %28 = arith.index_cast %c3_i32 : i32 to index
    %c0_15 = arith.constant 0 : index
    %c0_16 = arith.constant 0 : index
    %29 = vector.load %arg3[%28, %c0_15, %c0_16] : memref<8x8x128xf32, #tpu.memory_space<vmem>>, vector<1x8x128xf32>
    %30 = vector.shape_cast %29 : vector<1x8x128xf32> to vector<8x128xf32>
    %31 = arith.addf %23, %30 : vector<8x128xf32>
    %32 = arith.index_cast %c3_i32 : i32 to index
    %c0_17 = arith.constant 0 : index
    %c0_18 = arith.constant 0 : index
    %33 = vector.load %arg4[%32, %c0_17, %c0_18] : memref<8x8x128xf32, #tpu.memory_space<vmem>>, vector<1x8x128xf32>
    %34 = vector.shape_cast %33 : vector<1x8x128xf32> to vector<8x128xf32>
    %35 = vector.shape_cast %31 : vector<8x128xf32> to vector<1x8x128xf32>
    tpu.vector_store %arg4[%32, %c0_17, %c0_18], %35 {strides = array<i32>} : memref<8x8x128xf32, #tpu.memory_space<vmem>>, vector<1x8x128xf32>,
    %c4_i32 = arith.constant 4 : i32
    %36 = arith.index_cast %c4_i32 : i32 to index
    %c0_19 = arith.constant 0 : index
    %c0_20 = arith.constant 0 : index
    %37 = vector.load %arg3[%36, %c0_19, %c0_20] : memref<8x8x128xf32, #tpu.memory_space<vmem>>, vector<1x8x128xf32>
    %38 = vector.shape_cast %37 : vector<1x8x128xf32> to vector<8x128xf32>
    %39 = arith.addf %31, %38 : vector<8x128xf32>
    %40 = arith.index_cast %c4_i32 : i32 to index
    %c0_21 = arith.constant 0 : index
    %c0_22 = arith.constant 0 : index
    %41 = vector.load %arg4[%40, %c0_21, %c0_22] : memref<8x8x128xf32, #tpu.memory_space<vmem>>, vector<1x8x128xf32>
    %42 = vector.shape_cast %41 : vector<1x8x128xf32> to vector<8x128xf32>
    %43 = vector.shape_cast %39 : vector<8x128xf32> to vector<1x8x128xf32>
    tpu.vector_store %arg4[%40, %c0_21, %c0_22], %43 {strides = array<i32>} : memref<8x8x128xf32, #tpu.memory_space<vmem>>, vector<1x8x128xf32>,
    %c5_i32 = arith.constant 5 : i32
    %44 = arith.index_cast %c5_i32 : i32 to index
    %c0_23 = arith.constant 0 : index
    %c0_24 = arith.constant 0 : index
    %45 = vector.load %arg3[%44, %c0_23, %c0_24] : memref<8x8x128xf32, #tpu.memory_space<vmem>>, vector<1x8x128xf32>
    %46 = vector.shape_cast %45 : vector<1x8x128xf32> to vector<8x128xf32>
    %47 = arith.addf %39, %46 : vector<8x128xf32>
    %48 = arith.index_cast %c5_i32 : i32 to index
    %c0_25 = arith.constant 0 : index
    %c0_26 = arith.constant 0 : index
    %49 = vector.load %arg4[%48, %c0_25, %c0_26] : memref<8x8x128xf32, #tpu.memory_space<vmem>>, vector<1x8x128xf32>
    %50 = vector.shape_cast %49 : vector<1x8x128xf32> to vector<8x128xf32>
    %51 = vector.shape_cast %47 : vector<8x128xf32> to vector<1x8x128xf32>
    tpu.vector_store %arg4[%48, %c0_25, %c0_26], %51 {strides = array<i32>} : memref<8x8x128xf32, #tpu.memory_space<vmem>>, vector<1x8x128xf32>,
    %c6_i32 = arith.constant 6 : i32
    %52 = arith.index_cast %c6_i32 : i32 to index
    %c0_27 = arith.constant 0 : index
    %c0_28 = arith.constant 0 : index
    %53 = vector.load %arg3[%52, %c0_27, %c0_28] : memref<8x8x128xf32, #tpu.memory_space<vmem>>, vector<1x8x128xf32>
    %54 = vector.shape_cast %53 : vector<1x8x128xf32> to vector<8x128xf32>
    %55 = arith.addf %47, %54 : vector<8x128xf32>
    %56 = arith.index_cast %c6_i32 : i32 to index
    %c0_29 = arith.constant 0 : index
    %c0_30 = arith.constant 0 : index
    %57 = vector.load %arg4[%56, %c0_29, %c0_30] : memref<8x8x128xf32, #tpu.memory_space<vmem>>, vector<1x8x128xf32>
    %58 = vector.shape_cast %57 : vector<1x8x128xf32> to vector<8x128xf32>
    %59 = vector.shape_cast %55 : vector<8x128xf32> to vector<1x8x128xf32>
    tpu.vector_store %arg4[%56, %c0_29, %c0_30], %59 {strides = array<i32>} : memref<8x8x128xf32, #tpu.memory_space<vmem>>, vector<1x8x128xf32>,
    %c7_i32 = arith.constant 7 : i32
    %60 = arith.index_cast %c7_i32 : i32 to index
    %c0_31 = arith.constant 0 : index
    %c0_32 = arith.constant 0 : index
    %61 = vector.load %arg3[%60, %c0_31, %c0_32] : memref<8x8x128xf32, #tpu.memory_space<vmem>>, vector<1x8x128xf32>
    %62 = vector.shape_cast %61 : vector<1x8x128xf32> to vector<8x128xf32>
    %63 = arith.addf %55, %62 : vector<8x128xf32>
    %64 = arith.index_cast %c7_i32 : i32 to index
    %c0_33 = arith.constant 0 : index
    %c0_34 = arith.constant 0 : index
    %65 = vector.load %arg4[%64, %c0_33, %c0_34] : memref<8x8x128xf32, #tpu.memory_space<vmem>>, vector<1x8x128xf32>
    %66 = vector.shape_cast %65 : vector<1x8x128xf32> to vector<8x128xf32>
    %67 = vector.shape_cast %63 : vector<8x128xf32> to vector<1x8x128xf32>
    tpu.vector_store %arg4[%64, %c0_33, %c0_34], %67 {strides = array<i32>} : memref<8x8x128xf32, #tpu.memory_space<vmem>>, vector<1x8x128xf32>,
    %c8_i32 = arith.constant 8 : i32
    %c0_35 = arith.constant 0 : index
    %c0_36 = arith.constant 0 : index
    %68 = vector.load %arg5[%c0_35, %c0_36] : memref<8x128xf32, #tpu.memory_space<vmem>>, vector<8x128xf32>
    tpu.vector_store %arg5[%c0_35, %c0_36], %63 {strides = array<i32>} : memref<8x128xf32, #tpu.memory_space<vmem>>, vector<8x128xf32>,
    return
  }
  func.func @transform_0(%arg0: i32, %arg1: i32) -> (i32, i32) {
    %c0_i32 = arith.constant 0 : i32
    %c0_i32_0 = arith.constant 0 : i32
    return %arg0, %c0_i32 : i32, i32
  }
  func.func @transform_1(%arg0: i32, %arg1: i32) -> (i32, i32, i32) {
    %c0_i32 = arith.constant 0 : i32
    %c0_i32_0 = arith.constant 0 : i32
    return %arg1, %arg0, %c0_i32 : i32, i32, i32
  }
  func.func @transform_2(%arg0: i32, %arg1: i32) -> (i32, i32, i32) {
    %c0_i32 = arith.constant 0 : i32
    %c0_i32_0 = arith.constant 0 : i32
    return %arg1, %arg0, %c0_i32 : i32, i32, i32
  }
}

</mosaic_0001>

<bundles_post_ra>
// kernel: tpu_custom_call.1
= control target key start
LH: loop header
LB: loop body
LE: loop exit
PB: predicated region body
PF: predicated region fallthrough
CT: control target
= control target key end

     0   :  { %7 = vsyncpa [#allocation4], 0  ;;  %s248_s0 = inlined_call_operand.hbm [shape: f32[8,128], index: 0, kind: input, shape index: {}]   ;;  %s249_s1 = inlined_call_operand.hbm [shape: f32[8,8,128], index: 1, kind: input, shape index: {}]   ;;  %s250_s2 = inlined_call_operand.hbm [shape: f32[8,8,128], index: 2, kind: output, shape index: {}]  }
   0x1   :  { %8 = vsyncpa [#allocation7], 0 }
   0x2   :  { %9 = vsyncpa [#allocation5], 0  ;;  %s179_s9 = smov [#allocation3]   ;;  %s180_s11 = smov [#allocation6]  }
   0x3   :  { %s16_s10 = sshll.u32 %s179_s9, 4  ;;  %s25_s12 = sshll.u32 %s180_s11, 4  ;;  %s17_s10 = int_to_ptr.vmem [resolvable:$true] %s16_s10  ;;  %s199_s12 = int_to_ptr.vmem [resolvable:$true] %s25_s12 }
   0x4   :  { %s107_s15 = scalar_lea.hbm %s248_s0, 128 }
   0x5   :  { %p108_p0 = scmp.ne.s32.totalorder %s248_s0, %s107_s15  ;;  %p111_p1 = scmp.lt.u32.totalorder %s107_s15, %s248_s0 }
   0x7   :  { %p113_p2 = pnand %p111_p1, %p108_p0 }
   0x9   :  { %116 = shalt.err (!%p113_p2)
}
   0xa   :  { %s117_s20 = scalar_lea.vmem %s17_s10, 128  ;;  %p122_p4 = scmp.lt.s32.totalorder %s17_s10, %s17_s10 }
   0xb   :  { %p118_p3 = scmp.ne.s32.totalorder %s17_s10, %s117_s20  ;;  %p123_p5 = scmp.lt.s32.totalorder %s117_s20, %s117_s20 }
   0xd   :  { %p124_p6 = por %p123_p5, %p122_p4 }
   0xf   :  { %p125_p7 = pnand %p124_p6, %p118_p3 }
  0x11   :  { %128 = shalt.err (!%p125_p7)
}
  0x12   :  { %19 = dma.hbm_to_vmem [thread:$0]  %s248_s0, 128, %s17_s10, [#allocation4]  }
  0x13   :  { %s129_s25 = scalar_lea.hbm %s249_s1, 1024 }
  0x14   :  { %p130_p8 = scmp.ne.s32.totalorder %s249_s1, %s129_s25  ;;  %p133_p9 = scmp.lt.u32.totalorder %s129_s25, %s249_s1 }
  0x16   :  { %p135_p10 = pnand %p133_p9, %p130_p8 }
  0x18   :  { %138 = shalt.err (!%p135_p10)
}
  0x19   :  { %s139_s30 = scalar_lea.vmem %s199_s12, 1024  ;;  %p144_p12 = scmp.lt.s32.totalorder %s199_s12, %s199_s12 }
  0x1a   :  { %p140_p11 = scmp.ne.s32.totalorder %s199_s12, %s139_s30  ;;  %p145_p13 = scmp.lt.s32.totalorder %s139_s30, %s139_s30 }
  0x1c   :  { %p146_p0 = por %p145_p13, %p144_p12 }
  0x1e   :  { %p147_p1 = pnand %p146_p0, %p140_p11 }
  0x20   :  { %150 = shalt.err (!%p147_p1)
}
  0x21   :  { %s181_s0 = smov 128   ;;  %s182_s3 = smov 8  }
  0x22   :  { %31 = dma.hbm_to_vmem [thread:$0]  %s249_s1, 1024, %s199_s12, [#allocation7], %s181_s0, %s181_s0, %s182_s3  }
  0x23   :  { %173 = dma.done.wait [#allocation4], 128  }
  0x24   :  { %174 = vsyncadd [#allocation4], 4294967168 }
  0x25   :  { %175 = dma.done.wait [#allocation7], 1024  }
  0x26   :  { %176 = vsyncadd [#allocation7], 4294966272  ;;  %v42_v0 = vld [vmem:[#allocation3] sm:$0xff]  ;;  %v45_v1 = vld [vmem:[#allocation6] sm:$0xff]  ;;  %s183_s1 = smov [#allocation8]  }
  0x27   :  { %v49_v2 = vld [vmem:[#allocation6 + $0x8] sm:$0xff]  ;;  %v46_v3 = vadd.f32 %v45_v1, %v42_v0  ;;  %v54_v4 = vld [vmem:[#allocation6 + $0x10] sm:$0xff]  ;;  %v59_v6 = vld [vmem:[#allocation6 + $0x18] sm:$0xff]  ;;  %s89_s6 = sshll.u32 %s183_s1, 4  ;;  %s90_s6 = int_to_ptr.vmem [resolvable:$true] %s89_s6 }
  0x28   :  { %v64_v8 = vld [vmem:[#allocation6 + $0x20] sm:$0xff]  ;;  %v69_v10 = vld [vmem:[#allocation6 + $0x28] sm:$0xff]  ;;  %v74_v12 = vld [vmem:[#allocation6 + $0x30] sm:$0xff]  ;;  %s151_s7 = scalar_lea.vmem %s90_s6, 1024  ;;  %p156_p3 = scmp.lt.s32.totalorder %s90_s6, %s90_s6 }
  0x29   :  { %47 = vst [vmem:[#allocation8] sm:$0xff] %v46_v3  ;;  %v50_v5 = vadd.f32 %v49_v2, %v46_v3  ;;  %v79_v14 = vld [vmem:[#allocation6 + $0x38] sm:$0xff]  ;;  %p152_p2 = scmp.ne.s32.totalorder %s90_s6, %s151_s7  ;;  %p157_p4 = scmp.lt.s32.totalorder %s151_s7, %s151_s7 }
  0x2b   :  { %52 = vst [vmem:[#allocation8 + $0x8] sm:$0xff] %v50_v5  ;;  %v55_v7 = vadd.f32 %v54_v4, %v50_v5  ;;  %p158_p5 = por %p157_p4, %p156_p3 }
  0x2d   :  { %57 = vst [vmem:[#allocation8 + $0x10] sm:$0xff] %v55_v7  ;;  %v60_v9 = vadd.f32 %v59_v6, %v55_v7  ;;  %p159_p6 = pnand %p158_p5, %p152_p2 }
  0x2f   :  { %62 = vst [vmem:[#allocation8 + $0x18] sm:$0xff] %v60_v9  ;;  %v65_v11 = vadd.f32 %v64_v8, %v60_v9 }
  0x31   :  { %67 = vst [vmem:[#allocation8 + $0x20] sm:$0xff] %v65_v11  ;;  %v70_v13 = vadd.f32 %v69_v10, %v65_v11 }
  0x33   :  { %72 = vst [vmem:[#allocation8 + $0x28] sm:$0xff] %v70_v13  ;;  %v75_v15 = vadd.f32 %v74_v12, %v70_v13 }
  0x35   :  { %77 = vst [vmem:[#allocation8 + $0x30] sm:$0xff] %v75_v15  ;;  %v80_v16 = vadd.f32 %v79_v14, %v75_v15 }
  0x37   :  { %82 = vst [vmem:[#allocation8 + $0x38] sm:$0xff] %v80_v16 }
  0x38   :  { %162 = shalt.err (!%p159_p6)
}
  0x39   :  { %s163_s10 = scalar_lea.hbm %s250_s2, 1024 }
  0x3a   :  { %p164_p7 = scmp.ne.s32.totalorder %s250_s2, %s163_s10  ;;  %p167_p8 = scmp.lt.u32.totalorder %s163_s10, %s250_s2 }
  0x3c   :  { %p169_p9 = pnand %p167_p8, %p164_p7 }
  0x3e   :  { %172 = shalt.err (!%p169_p9)
}
  0x3f   :  { %95 = dma.vmem_to_hbm [thread:$0]  %s90_s6, 1024, %s250_s2, [#allocation5], %s181_s0, %s181_s0, %s182_s3  }
  0x40   :  { %177 = dma.done.wait [#allocation5], 1024  }
  0x41   :  { %178 = vsyncadd [#allocation5], 4294966272 }
  0x42   :  { %99 = vsyncpa [#allocation4], 1 }
  0x43   :  { %100 = vsyncpa [#allocation7], 1 }
  0x44   :  { %101 = vsyncpa [#allocation5], 1 }

</bundles_post_ra>
